<compile_context>
chip_gen: v7x
topology: tpu7x:2x2x1
jax: 0.10.0
libtpu: 0.0.40
codegen_flags: <defaults>
</compile_context>

<pallas_src>
import functools

import jax
import jax.numpy as jnp
from jax.experimental import pallas as pl
from jax.experimental.pallas import tpu as pltpu

_LANE = 128
_SUBLANE = 8


def _chip_config():
    """(core_splits, target_block_rows, vmem_limit_bytes | None) for this chip."""
    try:
        kind = jax.devices()[0].device_kind.lower()
    except Exception:
        return 1, 4096, None
    if "v7" in kind or "7x" in kind:
        # 2 TensorCores/chip. 8192x128 f32 block = 4 MiB; 2 inputs x 2 buffers
        # = 16 MiB, under the 32 MiB scoped-VMEM default (64 MiB physical).
        return 2, 8192, None
    if "v6" in kind:
        # Single TC; 128 MiB physical VMEM -> raise scoped limit so the 16 MiB
        # of double-buffered input blocks is comfortably allowed.
        return 1, 8192, 64 << 20
    # v5e (16 MiB scoped default) and unknown chips: conservative 4096-row
    # blocks (8 MiB double-buffered input footprint), no limit override.
    return 1, 4096, None


def _mse_partial_kernel(x_ref, t_ref, acc_ref, loss_ref, *,
                        rows, block_rows, max_blk, need_mask, inv_total):
    """Accumulate this core's partial sum of (x - t)^2 into a resident (8,128)
    f32 block; on the last step cross-lane reduce it (scaled by 1/N) to SMEM."""
    c = pl.program_id(0)
    j = pl.program_id(1)

    @pl.when(j == 0)
    def _():
        acc_ref[...] = jnp.zeros_like(acc_ref)

    d = x_ref[...].astype(jnp.float32) - t_ref[...].astype(jnp.float32)

    def fold(v):
        # (block_rows,128) -> (8,128): tile-aligned regroup + major-axis sum
        # (pure VALU adds across vregs; no per-step cross-lane XLU reduce).
        return jnp.sum(v.reshape(block_rows // _SUBLANE, _SUBLANE, _LANE), axis=0)

    if need_mask:
        # Logical (unclamped) block index for this (core, step).
        blk = c * pl.num_programs(1) + j
        is_edge = blk >= max_blk  # partial tail block or idle-core clamped re-read

        @pl.when(jnp.logical_not(is_edge))
        def _():
            # Interior blocks: unmasked fast path (no iota/select work).
            acc_ref[...] += fold(d * d)

        @pl.when(is_edge)
        def _():
            # Rows at or past the logical end contribute zero (covers the
            # partial tail block and the clamped re-read of an idle core).
            row0 = blk * block_rows
            local_row = jax.lax.broadcasted_iota(jnp.int32, (block_rows, _LANE), 0)
            dm = jnp.where(row0 + local_row < rows, d, jnp.float32(0.0))
            acc_ref[...] += fold(dm * dm)
    else:
        acc_ref[...] += fold(d * d)

    @pl.when(j == pl.num_programs(1) - 1)
    def _():
        # One in-kernel cross-lane reduce per core; host just adds ncores scalars.
        loss_ref[0, 0] = jnp.sum(acc_ref[...]) * jnp.float32(inv_total)


def content_loss_forward(x, target):
    """ContentLoss.forward: returns (input passthrough, scalar MSE loss)."""
    assert x.shape == target.shape and x.dtype == target.dtype
    total = int(x.size)
    itemsize = jnp.dtype(x.dtype).itemsize

    ncores, target_block_rows, vmem_limit = _chip_config()

    # Sublane packing multiple for the native dtype (8 rows f32, 16 bf16, 32 i8).
    packed_sublane = _SUBLANE * max(1, 4 // max(1, itemsize))

    # Flatten to a lane-dense 2-D slab in the native dtype (no upcast copy).
    # NOTE: zero-copy only for a row-major producer layout; a transposed/fused
    # producer layout would insert an XLA copy (perf only, not correctness).
    flat_x = x.reshape(-1)
    flat_t = target.reshape(-1)
    pad = (-total) % (packed_sublane * _LANE)
    if pad:
        # Rare; zero-padding both tensors identically adds nothing to sum((x-t)^2).
        flat_x = jnp.pad(flat_x, (0, pad))
        flat_t = jnp.pad(flat_t, (0, pad))
    rows = (total + pad) // _LANE              # multiple of packed_sublane
    x2 = flat_x.reshape(rows, _LANE)
    t2 = flat_t.reshape(rows, _LANE)

    block_rows = min(target_block_rows, rows)  # multiple of packed_sublane
    n_row_blocks = pl.cdiv(rows, block_rows)
    steps = pl.cdiv(n_row_blocks, ncores)
    max_blk = n_row_blocks - 1
    # Mask only when (cores x steps) coverage exceeds the real row count.
    need_mask = (ncores * steps * block_rows) != rows

    if need_mask:
        def in_index_map(c, j):
            # Clamp so the DMA window stays in-bounds; masked in-kernel.
            return (jnp.minimum(c * steps + j, max_blk), 0)
    else:
        def in_index_map(c, j):
            return (c * steps + j, 0)

    # Explicit 2-TensorCore split only where it exists (v7x); elsewhere the
    # core axis has extent 1 and stays "arbitrary".
    if ncores > 1:
        dims = (getattr(pltpu, "CORE_PARALLEL", pltpu.PARALLEL), pltpu.ARBITRARY)
    else:
        dims = ("arbitrary", "arbitrary")
    cp_kwargs = dict(dimension_semantics=dims)
    if vmem_limit is not None:
        cp_kwargs["vmem_limit_bytes"] = vmem_limit

    kernel = functools.partial(
        _mse_partial_kernel, rows=rows, block_rows=block_rows,
        max_blk=max_blk, need_mask=need_mask, inv_total=1.0 / total)

    _, partial_loss = pl.pallas_call(
        kernel,
        out_shape=(
            jax.ShapeDtypeStruct((ncores * _SUBLANE, _LANE), jnp.float32),
            jax.ShapeDtypeStruct((ncores, 1), jnp.float32),
        ),
        grid_spec=pltpu.PrefetchScalarGridSpec(
            num_scalar_prefetch=0,
            grid=(ncores, steps),
            in_specs=[
                pl.BlockSpec((block_rows, _LANE), in_index_map),
                pl.BlockSpec((block_rows, _LANE), in_index_map),
            ],
            out_specs=[
                pl.BlockSpec((_SUBLANE, _LANE), lambda c, j: (c, 0)),
                pl.BlockSpec((1, 1), lambda c, j: (c, 0),
                             memory_space=pltpu.MemorySpace.SMEM),
            ],
        ),
        compiler_params=pltpu.CompilerParams(**cp_kwargs),
        cost_estimate=pl.CostEstimate(
            flops=3 * total,
            bytes_accessed=2 * total * itemsize
            + ncores * (_SUBLANE * _LANE + 1) * 4,
            transcendentals=0),
    )(x2, t2)

    # Per-core partials are already scaled by 1/N; just add them.
    loss = jnp.sum(partial_loss)

    # forward() returns the input unchanged; the loss is a side quantity.
    # TODO(synk): PyTorch stores the loss on `self.loss` (module state); here it
    # is returned alongside the passthrough input instead.
    return x, loss


if __name__ == "__main__":
    key = jax.random.PRNGKey(0)
    k1, k2 = jax.random.split(key)
    # Small shape consistent with an NST feature map: (B, C, H, W)
    x = jax.random.normal(k1, (2, 4, 16, 16), dtype=jnp.float32)
    target = jax.random.normal(k2, (2, 4, 16, 16), dtype=jnp.float32)

    fwd = jax.jit(content_loss_forward)
    out, loss = fwd(x, target)
    jax.block_until_ready((out, loss))

    # Reference check (plain JAX mse + passthrough)
    ref_loss = jnp.mean((x - target) ** 2)
    assert jnp.allclose(loss, ref_loss, rtol=1e-5, atol=1e-6), (loss, ref_loss)
    assert jnp.array_equal(out, x)

    print("KERNEL_OK")
</pallas_src>

<mosaic_0001>
module attributes {stable_mosaic.version = 11 : i64} {
  func.func @_mse_partial_kernel(%arg0: i32, %arg1: i32, %arg2: memref<16x128xf32, #tpu.memory_space<vmem>>, %arg3: memref<16x128xf32, #tpu.memory_space<vmem>>, %arg4: memref<8x128xf32, #tpu.memory_space<vmem>>, %arg5: memref<1x1xf32, #tpu.memory_space<smem>>) attributes {dimension_semantics = [#tpu.dimension_semantics<arbitrary>, #tpu.dimension_semantics<arbitrary>], iteration_bounds = array<i64: 1, 1>, scalar_prefetch = 0 : i64, scratch_operands = 0 : i64, tpu.core_type = #tpu.core_type<tc>, window_params = [{transform_indices = @transform_0, window_bounds = array<i64: 16, 128>}, {transform_indices = @transform_1, window_bounds = array<i64: 16, 128>}, {transform_indices = @transform_2, window_bounds = array<i64: 8, 128>}, {transform_indices = @transform_3, window_bounds = array<i64: 1, 1>}]} {
    %c0_i32 = arith.constant 0 : i32
    %0 = arith.cmpi eq, %arg1, %c0_i32 : i32
    %1 = arith.extui %0 : i1 to i32
    %c0_i32_0 = arith.constant 0 : i32
    %2 = arith.cmpi ne, %1, %c0_i32_0 : i32
    scf.if %2 {
      %cst_10 = arith.constant 0.000000e+00 : f32
      %15 = vector.broadcast %cst_10 : f32 to vector<8x128xf32>
      %c0_11 = arith.constant 0 : index
      %c0_12 = arith.constant 0 : index
      %16 = vector.load %arg4[%c0_11, %c0_12] : memref<8x128xf32, #tpu.memory_space<vmem>>, vector<8x128xf32>
      tpu.vector_store %arg4[%c0_11, %c0_12], %15 {strides = array<i32>} : memref<8x128xf32, #tpu.memory_space<vmem>>, vector<8x128xf32>,
    } else {
    }
    %c0 = arith.constant 0 : index
    %c0_1 = arith.constant 0 : index
    %3 = vector.load %arg2[%c0, %c0_1] : memref<16x128xf32, #tpu.memory_space<vmem>>, vector<16x128xf32>
    %c0_2 = arith.constant 0 : index
    %c0_3 = arith.constant 0 : index
    %4 = vector.load %arg3[%c0_2, %c0_3] : memref<16x128xf32, #tpu.memory_space<vmem>>, vector<16x128xf32>
    %5 = arith.subf %3, %4 : vector<16x128xf32>
    %c0_4 = arith.constant 0 : index
    %c0_5 = arith.constant 0 : index
    %6 = vector.load %arg4[%c0_4, %c0_5] : memref<8x128xf32, #tpu.memory_space<vmem>>, vector<8x128xf32>
    %7 = arith.mulf %5, %5 : vector<16x128xf32>
    %8 = vector.shape_cast %7 : vector<16x128xf32> to vector<2x8x128xf32>
    %cst = arith.constant dense<0.000000e+00> : vector<8x128xf32>
    %9 = vector.multi_reduction <add>, %8, %cst [0] : vector<2x8x128xf32> to vector<8x128xf32>
    %10 = arith.addf %6, %9 : vector<8x128xf32>
    %c0_6 = arith.constant 0 : index
    %c0_7 = arith.constant 0 : index
    %11 = vector.load %arg4[%c0_6, %c0_7] : memref<8x128xf32, #tpu.memory_space<vmem>>, vector<8x128xf32>
    tpu.vector_store %arg4[%c0_6, %c0_7], %10 {strides = array<i32>} : memref<8x128xf32, #tpu.memory_space<vmem>>, vector<8x128xf32>,
    %c0_i32_8 = arith.constant 0 : i32
    %12 = arith.cmpi eq, %arg1, %c0_i32_8 : i32
    %13 = arith.extui %12 : i1 to i32
    %c0_i32_9 = arith.constant 0 : i32
    %14 = arith.cmpi ne, %13, %c0_i32_9 : i32
    scf.if %14 {
      %c0_10 = arith.constant 0 : index
      %c0_11 = arith.constant 0 : index
      %15 = vector.load %arg4[%c0_10, %c0_11] : memref<8x128xf32, #tpu.memory_space<vmem>>, vector<8x128xf32>
      %16 = vector.shape_cast %15 : vector<8x128xf32> to vector<1x8x128xf32>
      %cst_12 = arith.constant dense<0.000000e+00> : vector<1xf32>
      %17 = vector.multi_reduction <add>, %16, %cst_12 [1, 2] : vector<1x8x128xf32> to vector<1xf32>
      %18 = vector.shape_cast %17 : vector<1xf32> to vector<1x1x1xf32>
      %19 = vector.extract %18[0, 0, 0] : f32 from vector<1x1x1xf32>
      %cst_13 = arith.constant 4.8828125E-4 : f32
      %20 = arith.mulf %19, %cst_13 : f32
      %c0_14 = arith.constant 0 : index
      %c0_15 = arith.constant 0 : index
      %21 = memref.load %arg5[%c0_14, %c0_15] : memref<1x1xf32, #tpu.memory_space<smem>>
      memref.store %20, %arg5[%c0_14, %c0_15] : memref<1x1xf32, #tpu.memory_space<smem>>
    } else {
    }
    return
  }
  func.func @transform_0(%arg0: i32, %arg1: i32) -> (i32, i32) {
    %c1_i32 = arith.constant 1 : i32
    %0 = arith.muli %arg0, %c1_i32 : i32
    %1 = arith.addi %0, %arg1 : i32
    %c0_i32 = arith.constant 0 : i32
    %c0_i32_0 = arith.constant 0 : i32
    return %1, %c0_i32 : i32, i32
  }
  func.func @transform_1(%arg0: i32, %arg1: i32) -> (i32, i32) {
    %c1_i32 = arith.constant 1 : i32
    %0 = arith.muli %arg0, %c1_i32 : i32
    %1 = arith.addi %0, %arg1 : i32
    %c0_i32 = arith.constant 0 : i32
    %c0_i32_0 = arith.constant 0 : i32
    return %1, %c0_i32 : i32, i32
  }
  func.func @transform_2(%arg0: i32, %arg1: i32) -> (i32, i32) {
    %c0_i32 = arith.constant 0 : i32
    %c0_i32_0 = arith.constant 0 : i32
    return %arg0, %c0_i32 : i32, i32
  }
  func.func @transform_3(%arg0: i32, %arg1: i32) -> (i32, i32) {
    %c0_i32 = arith.constant 0 : i32
    %c0_i32_0 = arith.constant 0 : i32
    return %arg0, %c0_i32 : i32, i32
  }
}

</mosaic_0001>

<bundles_post_ra>
// kernel: content_loss_forward.1
= control target key start
LH: loop header
LB: loop body
LE: loop exit
PB: predicated region body
PF: predicated region fallthrough
CT: control target
= control target key end

     0   :  { %9 = vsyncpa [#allocation3], 0  ;;  %s230_s0 = inlined_call_operand.vmem [shape: f32[16,128], index: 0, kind: input, shape index: {}]   ;;  %s231_s1 = inlined_call_operand.vmem [shape: f32[16,128], index: 1, kind: input, shape index: {}]   ;;  %s232_s2 = inlined_call_operand.hbm [shape: f32[8,128], index: 2, kind: output, shape index: {0}]   ;;  %s233_s3 = inlined_call_operand.hbm [shape: f32[1,1], index: 3, kind: output, shape index: {1}]  }
   0x1   :  { %v64_v0 = vld [vmem:[%s230_s0] sm:$0xff]  ;;  %v65_v1 = vld [vmem:[%s230_s0 + $0x8] sm:$0xff] }
   0x2   :  { %v66_v2 = vld [vmem:[%s231_s1] sm:$0xff]  ;;  %v67_v3 = vld [vmem:[%s231_s1 + $0x8] sm:$0xff] }
   0x3   :  { %v68_v4 = vsub.f32 %v64_v0, %v66_v2 }
   0x4   :  { %10 = vsyncpa [#allocation4], 0  ;;  %v69_v5 = vsub.f32 %v65_v1, %v67_v3  ;;  %s172_s20 = smov [#allocation2]  }
   0x5   :  { %v71_v6 = vmul.f32 %v68_v4, %v68_v4  ;;  %s98_s21 = sshll.u32 %s172_s20, 4  ;;  %s99_s21 = int_to_ptr.vmem [resolvable:$true] %s98_s21 }
   0x6   :  { %v72_v7 = vmul.f32 %v69_v5, %v69_v5  ;;  %s136_s0 = scalar_lea.vmem %s99_s21, 128  ;;  %p141_p1 = scmp.lt.s32.totalorder %s99_s21, %s99_s21 }
   0x7   :  { %p137_p0 = scmp.ne.s32.totalorder %s99_s21, %s136_s0  ;;  %p142_p2 = scmp.lt.s32.totalorder %s136_s0, %s136_s0 }
   0x8   :  { %v73_v8 = vadd.f32 %v72_v7, %v71_v6 }
   0x9   :  { %p143_p3 = por %p142_p2, %p141_p1 }
   0xa   :  { %75 = vst [vmem:[#allocation2] sm:$0xff] %v73_v8  ;;  %80 = vadd.xlane.f32.xlu0 %v73_v8 }
   0xb   :  { %p144_p4 = pnand %p143_p3, %p137_p0 }
   0xd   :  { %147 = shalt.err (!%p144_p4)
}
   0xe   :  { %s148_s23 = scalar_lea.hbm %s232_s2, 128 }
   0xf   :  { %p149_p5 = scmp.ne.s32.totalorder %s232_s2, %s148_s23  ;;  %p152_p6 = scmp.lt.u32.totalorder %s148_s23, %s232_s2 }
  0x11   :  { %p154_p7 = pnand %p152_p6, %p149_p5 }
  0x13   :  { %157 = shalt.err (!%p154_p7)
}
  0x14   :  { %101 = dma.vmem_to_hbm [thread:$0]  %s99_s21, 128, %s232_s2, [#allocation3]  }
  0x15   :  { %s158_s7 = scalar_lea.hbm %s233_s3, 16 }
  0x16   :  { %p159_p8 = scmp.ne.s32.totalorder %s233_s3, %s158_s7  ;;  %p162_p9 = scmp.lt.u32.totalorder %s158_s7, %s233_s3 }
  0x18   :  { %p164_p10 = pnand %p162_p9, %p159_p8 }
  0x97   :  { %v81_v9 = vpop.xlane.xlu0 %80 }
  0x98   :  { %v82_v10 = vrot.slane %v81_v9, 4 }
  0x9a   :  { %v83_v11 = vadd.f32 %v82_v10, %v81_v9 }
  0x9c   :  { %v84_v12 = vrot.slane %v83_v11, 2 }
  0x9e   :  { %v85_v13 = vadd.f32 %v84_v12, %v83_v11 }
  0xa0   :  { %v86_v14 = vrot.slane %v85_v13, 1 }
  0xa2   :  { %v87_v15 = vadd.f32 %v86_v14, %v85_v13 }
  0xa4   :  { %131 = vpush %v87_v15 }
  0xd5   :  { %s132_s30 = spop %131 }
  0xd6   :  { %s89_s4 = smul.f32 0.00048828125, %s132_s30 }
  0xd8   :  { %91 = sst [smem:[#allocation5]] %s89_s4 }
  0xd9   :  { %167 = shalt.err (!%p164_p10)
}
  0xda   :  { %s173_s11 = smov [#allocation5]  }
  0xdb   :  { %109 = dma.smem_to_hbm %s173_s11, 16, %s233_s3, [#allocation4]  }
  0xdc   :  { %168 = dma.done.wait [#allocation3], 128  }
  0xdd   :  { %169 = vsyncadd [#allocation3], 4294967168 }
  0xde   :  { %170 = dma.done.wait [#allocation4], 16  }
  0xdf   :  { %171 = vsyncadd [#allocation4], 4294967280 }
  0xe0   :  { %116 = sfence }
  0xe1   :  { %117 = vsyncpa [#allocation3], 1 }
  0xe2   :  { %118 = vsyncpa [#allocation4], 1 }

</bundles_post_ra>
